<compile_context>
chip_gen: v6e
topology: v6e:2x2x1
jax: 0.10.0
libtpu: 0.0.40
codegen_flags: <defaults>
</compile_context>

<pallas_src>
import functools

import jax
import jax.numpy as jnp
from jax.experimental import pallas as pl
from jax.experimental.pallas import tpu as pltpu

_MIB = 1024 * 1024


# ----------------------------------------------------------------------------
# Hardware knobs
# ----------------------------------------------------------------------------
def _round_up(x, m):
    return -(-x // m) * m


def _hw_config():
    """Chip-generation knobs: tile cap, 2-TC split preference, bf16-exp path, VMEM size."""
    kind = ""
    try:
        kind = jax.devices()[0].device_kind.lower()
    except Exception:
        pass
    try:
        hw_vmem = int(pltpu.get_tpu_info().vmem_capacity_bytes)
    except Exception:
        hw_vmem = 64 * _MIB
    big_vmem = hw_vmem >= 96 * _MIB          # v5e/v6e: 128 MiB/TC, v7x: 64 MiB/TC
    cap = 2048 if big_vmem else 1024         # P-tile cap
    two_cores = ("v7" in kind) or not big_vmem
    use_bf16_exp = ("v6" in kind) or ("v7" in kind)   # v5e EUP has no bf16 path
    return cap, two_cores, use_bf16_exp, hw_vmem


def _choose_grid(p, cap, two_cores):
    """Pick a P-tile (multiple of 128) and a padded P the tile divides evenly.
    Padded rows/cols carry zero seg/sg, so they contribute exactly 0 to the loss."""
    p128 = _round_up(max(p, 128), 128)
    t = min(cap, p128)
    num = -(-p128 // t)
    if two_cores:
        # v7x: keep the 'parallel' i axis splittable evenly across the 2 TensorCores.
        if num == 1 and p128 >= 256:
            t = _round_up(p128 // 2, 128)
            num = -(-p128 // t)
        if num > 1 and num % 2 == 1:
            t2 = _round_up(-(-p128 // (num + 1)), 128)
            num2 = -(-p128 // t2)
            if num2 % 2 == 0:
                t, num = t2, num2
            else:
                num += 1          # pad one extra all-zero tile
    return t, num, num * t


# ----------------------------------------------------------------------------
# Pallas kernel: tiled dense bilateral filtering + energy reduction
# ----------------------------------------------------------------------------
def _dense_energy_kernel(lhs_ref, rhs_ref, seg_ref, sg_ref, out_ref, acc_ref, *,
                         scale, use_bf16_exp):
    n = pl.program_id(1)   # batch          (reduction)
    j = pl.program_id(2)   # j (key) tile   (reduction, innermost)

    @pl.when(jnp.logical_and(n == 0, j == 0))
    def _init():
        acc_ref[...] = jnp.zeros_like(acc_ref)

    lhs = lhs_ref[0]                      # (D, TI) bf16 augmented query features
    rhs = rhs_ref[0]                      # (D, TJ) bf16 augmented key features

    # Single-pass bf16 MXU matmul (DEFAULT precision), f32 accumulate.  The hi/lo split
    # of the features + the folded-in -0.5*||f||^2 / 1 columns give ~f32 accuracy for
    # the exp argument without HIGHEST-precision multi-pass emulation.
    arg = jax.lax.dot_general(lhs, rhs, (((0,), (0,)), ((), ())),
                              preferred_element_type=jnp.float32)    # (TI, TJ)
    # true argument is -0.5*||f_i - f_j||^2 <= 0; clamp rounding spill above 0
    arg = jnp.minimum(arg, 0.0)

    if use_bf16_exp:
        # v6e/v7x: bf16 EUP path (~2x f32 throughput) and the separate f32->bf16
        # cast of the kmat tile disappears.
        kmat = jnp.exp(arg.astype(jnp.bfloat16))                     # (TI, TJ) bf16
    else:
        # v5e: EUP has no bf16 path, keep f32 exp and cast the result.
        # TODO(synk): a VPU fast-exp could split the transcendental load on v5e.
        kmat = jnp.exp(arg).astype(jnp.bfloat16)                     # (TI, TJ) bf16

    # filt[k, i] = sum_j kmat[i, j] * seg[k, j]  (bilateral-filtered segmentations),
    # bf16 x bf16 -> f32, lane-dense along TI in the MXU output.
    filt = jax.lax.dot_general(seg_ref[0], kmat, (((1,), (1,)), ((), ())),
                               preferred_element_type=jnp.float32)   # (K, TI)

    partial = jnp.sum(sg_ref[0] * filt, keepdims=True)               # (1, 1)
    acc_ref[...] += partial   # broadcast-accumulate into the (8,128) scratch

    # only emit the (scaled) per-i-tile partial once, on the last reduction step
    @pl.when(jnp.logical_and(n == pl.num_programs(1) - 1,
                             j == pl.num_programs(2) - 1))
    def _finalize():
        out_ref[...] = acc_ref[...] * scale


def _dense_energy_pallas(lhs, rhs, seg_b, sg, weight):
    """lhs/rhs: (N, P, D) bf16; seg_b: (N, P, K) bf16; sg: (N, P, K) f32."""
    N, P, D = lhs.shape
    K = seg_b.shape[-1]
    cap, two_cores, use_bf16_exp, hw_vmem = _hw_config()
    t, num_p, p_pad = _choose_grid(P, cap, two_cores)
    scale = -float(weight) / N

    def lane_major(x):
        xt = jnp.transpose(x, (0, 2, 1))          # (N, C, P)
        if p_pad != P:
            xt = jnp.pad(xt, ((0, 0), (0, 0), (0, p_pad - P)))
        return xt

    lhs_t = lane_major(lhs)       # (N, D, P_pad) bf16
    rhs_t = lane_major(rhs)       # (N, D, P_pad) bf16
    seg_t = lane_major(seg_b)     # (N, K, P_pad) bf16
    sg_t = lane_major(sg)         # (N, K, P_pad) f32

    # VMEM budget: arg f32 (4B/elem) + kmat bf16 (2B/elem) + cast/clamp temporaries
    # + double-buffered (now tiny, lane-major) input tiles + headroom.
    vmem_limit = int(min(hw_vmem - 8 * _MIB,
                         max(32 * _MIB, t * t * 12 + 16 * _MIB)))

    out = pl.pallas_call(
        functools.partial(_dense_energy_kernel, scale=scale,
                          use_bf16_exp=use_bf16_exp),
        # lane-dense per-i-tile partials; every element of a block holds the same
        # partial, the wrapper picks one per block and sums
        out_shape=jax.ShapeDtypeStruct((num_p * 8, 128), jnp.float32),
        grid_spec=pltpu.PrefetchScalarGridSpec(
            num_scalar_prefetch=0,
            grid=(num_p, N, num_p),               # i parallel, (batch, j) reductions last
            in_specs=[
                pl.BlockSpec((1, D, t), lambda i, n, j: (n, 0, i)),  # lhs (query rows)
                pl.BlockSpec((1, D, t), lambda i, n, j: (n, 0, j)),  # rhs (key rows)
                pl.BlockSpec((1, K, t), lambda i, n, j: (n, 0, j)),  # seg (filter input)
                pl.BlockSpec((1, K, t), lambda i, n, j: (n, 0, i)),  # seg*gate
            ],
            out_specs=pl.BlockSpec((8, 128), lambda i, n, j: (i, 0)),
            scratch_shapes=[pltpu.VMEM((8, 128), jnp.float32)],
        ),
        compiler_params=pltpu.CompilerParams(
            dimension_semantics=("parallel", "arbitrary", "arbitrary"),
            vmem_limit_bytes=vmem_limit),
    )(lhs_t, rhs_t, seg_t, sg_t)

    partials = out.reshape(num_p, 8, 128)[:, 0, 0]
    return jnp.sum(partials).reshape(1)


# ----------------------------------------------------------------------------
# Glue: PyTorch-style interpolation + Gate construction (plain JAX)
# ----------------------------------------------------------------------------
def _interp_nearest(x, scale):
    """F.interpolate(mode='nearest'); x is (..., H, W)."""
    H, W = x.shape[-2:]
    Ho, Wo = int(H * scale), int(W * scale)
    hi = jnp.minimum(jnp.floor(jnp.arange(Ho) * (H / Ho)), H - 1).astype(jnp.int32)
    wi = jnp.minimum(jnp.floor(jnp.arange(Wo) * (W / Wo)), W - 1).astype(jnp.int32)
    return x[..., hi, :][..., wi]


def _interp_bilinear(x, scale):
    """F.interpolate(mode='bilinear', align_corners=False); x is (..., H, W)."""
    H, W = x.shape[-2:]
    Ho, Wo = int(H * scale), int(W * scale)

    def src(out_n, in_n):
        c = (jnp.arange(out_n, dtype=jnp.float32) + 0.5) * (in_n / out_n) - 0.5
        c = jnp.clip(c, 0.0, in_n - 1)
        lo = jnp.floor(c).astype(jnp.int32)
        hi = jnp.minimum(lo + 1, in_n - 1)
        w = c - lo.astype(jnp.float32)
        return lo, hi, w

    h0, h1, hw = src(Ho, H)
    w0, w1, ww = src(Wo, W)
    v00 = x[..., h0, :][..., w0]
    v01 = x[..., h0, :][..., w1]
    v10 = x[..., h1, :][..., w0]
    v11 = x[..., h1, :][..., w1]
    top = v00 * (1.0 - ww) + v01 * ww
    bot = v10 * (1.0 - ww) + v11 * ww
    return top * (1.0 - hw[:, None]) + bot * hw[:, None]


def _preprocess(images, segmentations, ROIs, seg_label,
                sigma_rgb, sigma_xy, scale_factor):
    si = _interp_nearest(images, scale_factor)                 # (N, C, h, w)
    ss = _interp_bilinear(segmentations, scale_factor)         # (N, K, h, w)
    sr = _interp_nearest(ROIs[:, None], scale_factor)[:, 0]    # (N, h, w)
    sl = _interp_nearest(seg_label, scale_factor)              # (N, 1, h, w)
    unlabel = (sl.astype(jnp.int32) == 255)[:, 0]              # (N, h, w)

    # Gate = ROI - max_k(seg); Gate[unlabel] = 1; Gate[Gate < 0] = 0
    gate = sr - jnp.max(ss, axis=1)
    gate = jnp.where(unlabel, 1.0, gate)
    gate = jnp.maximum(gate, 0.0)

    seg = ss * sr[:, None]                                     # (N, K, h, w)

    N, C, h, w = si.shape
    K = ss.shape[1]
    P = h * w
    sigma_xy_eff = sigma_xy * scale_factor                     # as in the module

    yy, xx = jnp.meshgrid(jnp.arange(h, dtype=jnp.float32),
                          jnp.arange(w, dtype=jnp.float32), indexing="ij")
    xy = jnp.stack([xx, yy], axis=-1).reshape(1, P, 2) / sigma_xy_eff
    xy = jnp.broadcast_to(xy, (N, P, 2))
    rgb = si.transpose(0, 2, 3, 1).reshape(N, P, C) / sigma_rgb
    feat = jnp.concatenate([xy, rgb], axis=-1).astype(jnp.float32)   # (N, P, 2+C)

    seg_flat = seg.transpose(0, 2, 3, 1).reshape(N, P, K).astype(jnp.float32)
    gate_flat = gate.reshape(N, P, 1).astype(jnp.float32)
    return feat, seg_flat, gate_flat


def _split_bf16(x):
    hi = x.astype(jnp.bfloat16)
    lo = (x - hi.astype(jnp.float32)).astype(jnp.bfloat16)
    return hi, lo


def _augment_features(feat):
    """Build hi/lo-split augmented lhs/rhs so that, with a single-pass bf16
    matmul accumulated in f32,
        lhs_i . rhs_j ~= f_i.f_j - 0.5||f_i||^2 - 0.5||f_j||^2 = -0.5||f_i-f_j||^2
    with near-f32 accuracy (cross terms of the hi/lo split recover the bits the
    bf16 cast drops; only the tiny lo*lo term is neglected)."""
    s = -0.5 * jnp.sum(feat * feat, axis=-1, keepdims=True)    # (N, P, 1) f32
    f_hi, f_lo = _split_bf16(feat)
    s_hi, s_lo = _split_bf16(s)
    ones = jnp.ones_like(s_hi)
    lhs = jnp.concatenate([f_hi, f_lo, f_hi, s_hi, s_lo, ones, ones], axis=-1)
    rhs = jnp.concatenate([f_hi, f_hi, f_lo, ones, ones, s_hi, s_lo], axis=-1)
    return lhs, rhs                                            # (N, P, 3F+4) bf16


def dense_energy_loss(images, segmentations, ROIs, seg_label, *,
                      weight, sigma_rgb, sigma_xy, scale_factor):
    feat, seg, gate = _preprocess(images, segmentations, ROIs, seg_label,
                                  sigma_rgb, sigma_xy, scale_factor)
    lhs, rhs = _augment_features(feat)
    seg_b = seg.astype(jnp.bfloat16)     # filter input (bf16 MXU operand)
    sg = seg * gate                      # gate pre-multiplied (f32), drops the gate stream
    return _dense_energy_pallas(lhs, rhs, seg_b, sg, weight)


# ----------------------------------------------------------------------------
# Pure-JAX reference (brute force, f32) for a numerical sanity check
# ----------------------------------------------------------------------------
def _reference_loss(feat, seg, gate, weight):
    N = feat.shape[0]
    d2 = jnp.sum((feat[:, :, None, :] - feat[:, None, :, :]) ** 2, axis=-1)
    kmat = jnp.exp(-0.5 * d2)
    filtered = jnp.einsum("npq,nqk->npk", kmat, seg,
                          precision=jax.lax.Precision.HIGHEST)
    loss = jnp.sum(seg * gate * filtered)
    return jnp.asarray([-weight * loss / N], dtype=jnp.float32)


# ----------------------------------------------------------------------------
if __name__ == "__main__":
    # DenseEnergyLoss hyper-parameters (set deterministically in-script)
    WEIGHT = 0.1
    SIGMA_RGB = 15.0
    SIGMA_XY = 80.0
    SCALE_FACTOR = 0.5

    N, C, K, H, W = 2, 3, 4, 16, 16

    key = jax.random.PRNGKey(0)
    k_img, k_seg, k_roi, k_lab = jax.random.split(key, 4)

    images = jax.random.uniform(k_img, (N, C, H, W), jnp.float32, 0.0, 255.0)
    segmentations = jax.nn.softmax(
        jax.random.normal(k_seg, (N, K, H, W), jnp.float32), axis=1)
    ROIs = (jax.random.uniform(k_roi, (N, H, W)) > 0.3).astype(jnp.float32)
    labels = jax.random.randint(k_lab, (N, 1, H, W), 0, K + 1)
    seg_label = jnp.where(labels == K, 255, labels).astype(jnp.float32)

    out = dense_energy_loss(images, segmentations, ROIs, seg_label,
                            weight=WEIGHT, sigma_rgb=SIGMA_RGB,
                            sigma_xy=SIGMA_XY, scale_factor=SCALE_FACTOR)
    out = jax.block_until_ready(out)

    # sanity check against a brute-force pure-JAX f32 implementation
    feat, seg, gate = _preprocess(images, segmentations, ROIs, seg_label,
                                  SIGMA_RGB, SIGMA_XY, SCALE_FACTOR)
    ref = jax.block_until_ready(_reference_loss(feat, seg, gate, WEIGHT))

    # bf16 filter operands + hi/lo-split distance (+ bf16 exp on v6e/v7x) =>
    # loosened (but still tight) tolerance
    if not jnp.allclose(out, ref, rtol=2e-2, atol=2e-3):
        raise AssertionError(f"mismatch: pallas={out} ref={ref}")

    print("KERNEL_OK")
</pallas_src>

<mosaic_0001>
module attributes {stable_mosaic.version = 11 : i64} {
  func.func @_dense_energy_kernel(%arg0: i32, %arg1: i32, %arg2: i32, %arg3: memref<1x19x128xbf16, #tpu.memory_space<vmem>>, %arg4: memref<1x19x128xbf16, #tpu.memory_space<vmem>>, %arg5: memref<1x4x128xbf16, #tpu.memory_space<vmem>>, %arg6: memref<1x4x128xf32, #tpu.memory_space<vmem>>, %arg7: memref<8x128xf32, #tpu.memory_space<vmem>>, %arg8: memref<8x128xf32, #tpu.memory_space<vmem>>) attributes {dimension_semantics = [#tpu.dimension_semantics<parallel>, #tpu.dimension_semantics<arbitrary>, #tpu.dimension_semantics<arbitrary>], iteration_bounds = array<i64: 1, 2, 1>, scalar_prefetch = 0 : i64, scratch_operands = 1 : i64, tpu.core_type = #tpu.core_type<tc>, window_params = [{transform_indices = @transform_0, window_bounds = array<i64: 1, 19, 128>}, {transform_indices = @transform_1, window_bounds = array<i64: 1, 19, 128>}, {transform_indices = @transform_2, window_bounds = array<i64: 1, 4, 128>}, {transform_indices = @transform_3, window_bounds = array<i64: 1, 4, 128>}, {transform_indices = @transform_4, window_bounds = array<i64: 8, 128>}]} {
    %c0_i32 = arith.constant 0 : i32
    %0 = arith.cmpi eq, %arg1, %c0_i32 : i32
    %c0_i32_0 = arith.constant 0 : i32
    %1 = arith.cmpi eq, %arg2, %c0_i32_0 : i32
    %2 = arith.andi %0, %1 : i1
    %3 = arith.extui %2 : i1 to i32
    %c0_i32_1 = arith.constant 0 : i32
    %4 = arith.cmpi ne, %3, %c0_i32_1 : i32
    scf.if %4 {
      %cst_22 = arith.constant 0.000000e+00 : f32
      %34 = vector.broadcast %cst_22 : f32 to vector<8x128xf32>
      %c0_23 = arith.constant 0 : index
      %c0_24 = arith.constant 0 : index
      %35 = vector.load %arg8[%c0_23, %c0_24] : memref<8x128xf32, #tpu.memory_space<vmem>>, vector<8x128xf32>
      tpu.vector_store %arg8[%c0_23, %c0_24], %34 {strides = array<i32>} : memref<8x128xf32, #tpu.memory_space<vmem>>, vector<8x128xf32>,
    } else {
    }
    %c0 = arith.constant 0 : index
    %c0_2 = arith.constant 0 : index
    %c0_3 = arith.constant 0 : index
    %5 = vector.load %arg3[%c0, %c0_2, %c0_3] : memref<1x19x128xbf16, #tpu.memory_space<vmem>>, vector<1x19x128xbf16>
    %6 = vector.shape_cast %5 : vector<1x19x128xbf16> to vector<19x128xbf16>
    %c0_4 = arith.constant 0 : index
    %c0_5 = arith.constant 0 : index
    %c0_6 = arith.constant 0 : index
    %7 = vector.load %arg4[%c0_4, %c0_5, %c0_6] : memref<1x19x128xbf16, #tpu.memory_space<vmem>>, vector<1x19x128xbf16>
    %8 = vector.shape_cast %7 : vector<1x19x128xbf16> to vector<19x128xbf16>
    %cst = arith.constant dense<0.000000e+00> : vector<128x128xf32>
    %9 = tpu.matmul %6, %8, %cst {dimension_numbers = #tpu.dot_dimension_numbers<[0], [0], [1], [1], [0, 1, 1, 1], [], []>} : vector<19x128xbf16>, vector<19x128xbf16>, vector<128x128xf32> -> vector<128x128xf32>
    %cst_7 = arith.constant 0.000000e+00 : f32
    %10 = vector.broadcast %cst_7 : f32 to vector<128x128xf32>
    %11 = arith.minimumf %9, %10 : vector<128x128xf32>
    %12 = math.exp %11 : vector<128x128xf32>
    %13 = arith.truncf %12 : vector<128x128xf32> to vector<128x128xbf16>
    %c0_8 = arith.constant 0 : index
    %c0_9 = arith.constant 0 : index
    %c0_10 = arith.constant 0 : index
    %14 = vector.load %arg5[%c0_8, %c0_9, %c0_10] : memref<1x4x128xbf16, #tpu.memory_space<vmem>>, vector<1x4x128xbf16>
    %15 = vector.shape_cast %14 : vector<1x4x128xbf16> to vector<4x128xbf16>
    %cst_11 = arith.constant dense<0.000000e+00> : vector<4x128xf32>
    %16 = tpu.matmul %15, %13, %cst_11 {dimension_numbers = #tpu.dot_dimension_numbers<[1], [1], [0], [0], [0, 0, 1, 0], [], []>} : vector<4x128xbf16>, vector<128x128xbf16>, vector<4x128xf32> -> vector<4x128xf32>
    %c0_12 = arith.constant 0 : index
    %c0_13 = arith.constant 0 : index
    %c0_14 = arith.constant 0 : index
    %17 = vector.load %arg6[%c0_12, %c0_13, %c0_14] : memref<1x4x128xf32, #tpu.memory_space<vmem>>, vector<1x4x128xf32>
    %18 = vector.shape_cast %17 : vector<1x4x128xf32> to vector<4x128xf32>
    %19 = arith.mulf %18, %16 : vector<4x128xf32>
    %20 = vector.shape_cast %19 : vector<4x128xf32> to vector<1x4x128xf32>
    %cst_15 = arith.constant dense<0.000000e+00> : vector<1xf32>
    %21 = vector.multi_reduction <add>, %20, %cst_15 [1, 2] : vector<1x4x128xf32> to vector<1xf32>
    %22 = vector.shape_cast %21 : vector<1xf32> to vector<1x1x1xf32>
    %23 = vector.extract %22[0, 0, 0] : f32 from vector<1x1x1xf32>
    %24 = vector.broadcast %23 : f32 to vector<1x1xf32>
    %c0_16 = arith.constant 0 : index
    %c0_17 = arith.constant 0 : index
    %25 = vector.load %arg8[%c0_16, %c0_17] : memref<8x128xf32, #tpu.memory_space<vmem>>, vector<8x128xf32>
    %26 = vector.broadcast %24 : vector<1x1xf32> to vector<8x128xf32>
    %27 = arith.addf %25, %26 : vector<8x128xf32>
    %c0_18 = arith.constant 0 : index
    %c0_19 = arith.constant 0 : index
    %28 = vector.load %arg8[%c0_18, %c0_19] : memref<8x128xf32, #tpu.memory_space<vmem>>, vector<8x128xf32>
    tpu.vector_store %arg8[%c0_18, %c0_19], %27 {strides = array<i32>} : memref<8x128xf32, #tpu.memory_space<vmem>>, vector<8x128xf32>,
    %c1_i32 = arith.constant 1 : i32
    %29 = arith.cmpi eq, %arg1, %c1_i32 : i32
    %c0_i32_20 = arith.constant 0 : i32
    %30 = arith.cmpi eq, %arg2, %c0_i32_20 : i32
    %31 = arith.andi %29, %30 : i1
    %32 = arith.extui %31 : i1 to i32
    %c0_i32_21 = arith.constant 0 : i32
    %33 = arith.cmpi ne, %32, %c0_i32_21 : i32
    scf.if %33 {
      %c0_22 = arith.constant 0 : index
      %c0_23 = arith.constant 0 : index
      %34 = vector.load %arg8[%c0_22, %c0_23] : memref<8x128xf32, #tpu.memory_space<vmem>>, vector<8x128xf32>
      %cst_24 = arith.constant -5.000000e-02 : f32
      %35 = vector.broadcast %cst_24 : f32 to vector<8x128xf32>
      %36 = arith.mulf %34, %35 : vector<8x128xf32>
      %c0_25 = arith.constant 0 : index
      %c0_26 = arith.constant 0 : index
      %37 = vector.load %arg7[%c0_25, %c0_26] : memref<8x128xf32, #tpu.memory_space<vmem>>, vector<8x128xf32>
      tpu.vector_store %arg7[%c0_25, %c0_26], %36 {strides = array<i32>} : memref<8x128xf32, #tpu.memory_space<vmem>>, vector<8x128xf32>,
    } else {
    }
    return
  }
  func.func @transform_0(%arg0: i32, %arg1: i32, %arg2: i32) -> (i32, i32, i32) {
    %c0_i32 = arith.constant 0 : i32
    %c0_i32_0 = arith.constant 0 : i32
    return %arg1, %c0_i32, %arg0 : i32, i32, i32
  }
  func.func @transform_1(%arg0: i32, %arg1: i32, %arg2: i32) -> (i32, i32, i32) {
    %c0_i32 = arith.constant 0 : i32
    %c0_i32_0 = arith.constant 0 : i32
    return %arg1, %c0_i32, %arg2 : i32, i32, i32
  }
  func.func @transform_2(%arg0: i32, %arg1: i32, %arg2: i32) -> (i32, i32, i32) {
    %c0_i32 = arith.constant 0 : i32
    %c0_i32_0 = arith.constant 0 : i32
    return %arg1, %c0_i32, %arg2 : i32, i32, i32
  }
  func.func @transform_3(%arg0: i32, %arg1: i32, %arg2: i32) -> (i32, i32, i32) {
    %c0_i32 = arith.constant 0 : i32
    %c0_i32_0 = arith.constant 0 : i32
    return %arg1, %c0_i32, %arg0 : i32, i32, i32
  }
  func.func @transform_4(%arg0: i32, %arg1: i32, %arg2: i32) -> (i32, i32) {
    %c0_i32 = arith.constant 0 : i32
    %c0_i32_0 = arith.constant 0 : i32
    return %arg0, %c0_i32 : i32, i32
  }
}

</mosaic_0001>

<bundles_post_ra>
// kernel: tpu_custom_call.1
= control target key start
LH: loop header
LB: loop body
LE: loop exit
PB: predicated region body
PF: predicated region fallthrough
CT: control target
= control target key end

     0   :  { %9 = vsyncpa [#allocation4], 0  ;;  %s966_s15 = smov 0   ;;  %s968_s16 = smov 0   ;;  %s1075_s0 = inlined_call_operand.vmem [shape: bf16[2,19,128], index: 0, kind: input, shape index: {}]   ;;  %s1076_s1 = inlined_call_operand.vmem [shape: bf16[2,19,128], index: 1, kind: input, shape index: {}]   ;;  %s1077_s2 = inlined_call_operand.vmem [shape: bf16[2,4,128], index: 2, kind: input, shape index: {}]   ;;  %s1078_s3 = inlined_call_operand.vmem [shape: f32[2,4,128], index: 3, kind: input, shape index: {}]   ;;  %s1079_s4 = inlined_call_operand.hbm [shape: f32[8,128], index: 4, kind: output, shape index: {}]  }
   0x1   :  { %s970_s17 = smov 0  }
   0x2 LB: > { %s722_s18 = sadd.s32 4294967295, %s934_s17   ;;  %s30_s19 = sadd.s32 1, %s930_s16  ;;  %s934_s17 = sphi %s970_s17, %s15_s17   ;;  %s930_s16 = sphi %s968_s16, %s1082_s16   ;;  %s926_s15 = sphi %s966_s15, %s1081_s15  }
   0x3   : > { %p32_p0 = scmp.ge.s32.totalorder %s30_s19, 2  ;;  %p725_p1 = scmp.ge.s32.totalorder %s934_s17, 1 }
   0x4   : > { %p230_p2 = scmp.lt.s32.totalorder %s934_s17, 3 }
   0x5   : > { %s1084_s19 = smov (%p32_p0, %s30_s19), 0 }
   0x6   : > { %p231_p3 = pnand %p725_p1, %p230_p2 }
   0x7   : > { %p276_p4 = scmp.lt.s32.totalorder (!%p231_p3), %s926_s15, 1  ;;  %p307_p5 = scmp.eq.s32.totalorder (!%p231_p3), %s926_s15, 0 }
   0x8   : > { %234 = sbr.rel (%p231_p3) target bundleno = 852 (0x354), region = 36 }
   0xd   : > { %s277_s20 = scalar_select %p276_p4, %s926_s15, 1  ;;  %v936_v0 = vmov (%p307_p5), 0.0  }
   0xe   : > { %312 = sbr.rel (!%p307_p5) target bundleno = 19 (0x13), region = 40  ;;  %313 = vst [vmem:[#allocation2] sm:$0xff] (%p307_p5), %v936_v0 }
   0xf   : > { %s809_s21 = smul.u32 12, %s277_s20  ;;  %s728_s22 = sshll.u32 %s277_s20, 1 }
  0x10   : > { %s993_s25 = scalar_lea.vmem %s1077_s2, %s728_s22  ;;  %s729_s26 = sshll.u32 %s277_s20, 2 }
  0x11   : > { %s283_s29 = scalar_lea.vmem %s1075_s0, %s809_s21  ;;  %s291_s6 = scalar_lea.vmem %s1076_s1, %s809_s21 }
  0x12   : > { %s1004_s9 = scalar_lea.vmem %s1078_s3, %s729_s26 }
  0x13 PF: > { %v848_v1 = vld [vmem:[%s283_s29] sm:$0xff]   ;;  %v849_v2 = vld [vmem:[%s283_s29 + $0x8] ss:$0 sps:$4 sm:$0x33]   ;;  %vm380_vm0 = vcmask 1040384   ;;  %vm381_vm1 = vcmask 1041408  }
  0x14   : > { %330 = vxpose.xlu0.c.b16.start [1/2] (short) %v848_v1, 128  ;;  %v850_v3 = vld [vmem:[%s291_s6 + $0x8] ss:$0 sps:$4 sm:$0x33]   ;;  %v937_v4 = vmov 65535   ;;  %v851_v8 = vld [vmem:[%s291_s6] sm:$0xff]   ;;  %vm355_vm2 = vcmask 154624  }
  0x15   : > { %v382_v5 = vsel %vm380_vm0, 4294967295, %v937_v4  ;;  %v938_v17 = vmov 0.0   ;;  %vm939_vm3 = vmmov 0   ;;  %vm583_vm4 = vcmask 1043456   ;;  %p598_p6 = scmp.eq.s32.totalorder %s926_s15, 1 }
  0x16   : > { %v383_v6 = vsel %vm381_vm1, %v382_v5, 0  ;;  %789 = vmatprep.subr.bf16.mxu1 %v938_v17  ;;  %805 = vmatprep.mubr.msk.bf16.mxu1 %vm939_vm3, %v938_v17 }
  0x17   : > { %v385_v7 = vand.u32 %v850_v3, %v383_v6 }
  0x18   : > { %331 = vxpose.xlu0.c.b16.end [2/2] (short) %v849_v2, 128 }
  0x19   : > { %769 = vmatprep.subr.bf16.mxu0 %v385_v7 }
  0x1a   : > { %770 = vmatpush3.bf16.msra.mxu0 %v385_v7 }
  0x1b   : > { %771 = vmatprep.subr.bf16.mxu0 %v851_v8 }
  0x1e   : > { %772 = vmatpush3.bf16.msra.mxu0 %v851_v8 }
  0x76   : > { %v338_v9 = vpop.trf.xlu0 }
  0x77   : > { %773 = vmatprep.mubr.msk.bf16.mxu0 %vm355_vm2, %v338_v9 }
  0x7a   : > { %v339_v10 = vpop.trf.xlu0 }
  0x7b   : > { %774 = vmatmul.mubr.msk.bf16.vlgmr.msra.gmra.mxu0 %vm355_vm2, %v339_v10 }
  0x7e   : > { %v340_v11 = vpop.trf.xlu0 }
  0x7f   : > { %777 = vmatprep.mubr.msk.bf16.mxu0 %vm355_vm2, %v340_v11 }
  0x82   : > { %v341_v12 = vpop.trf.xlu0 }
  0x83   : > { %778 = vmatmul.mubr.msk.bf16.gmra.mxu0 %vm355_vm2, %v341_v12 }
  0x86   : > { %v342_v13 = vpop.trf.xlu0 }
  0x87   : > { %781 = vmatprep.mubr.msk.bf16.mxu0 %vm355_vm2, %v342_v13 }
  0x8a   : > { %v343_v14 = vpop.trf.xlu0 }
  0x8b   : > { %782 = vmatmul.mubr.msk.bf16.gmra.mxu0 %vm355_vm2, %v343_v14 }
  0x8e   : > { %v344_v15 = vpop.trf.xlu0 }
  0x8f   : > { %785 = vmatprep.mubr.msk.bf16.mxu0 %vm355_vm2, %v344_v15 }
  0x92   : > { %v345_v16 = vpop.trf.xlu0 }
  0x93   : > { %786 = vmatmul.mubr.msk.bf16.gmra.mxu0 %vm355_vm2, %v345_v16 }
 0x13b   : > { %v775_v18 = vpop.f32.mrf.mxu0 }
 0x13c   : > { %v486_v19 = vmin.f32 %v775_v18, 0.0 }
 0x13d   : > { %v421_v20 = vpop.f32.mrf.mxu0 }
 0x13e   : > { %v484_v21 = vmin.f32 %v421_v20, 0.0  ;;  %v504_v22 = vmul.f32 1.442695, %v486_v19 }
 0x13f   : > { %v776_v23 = vpop.f32.mrf.mxu0 }
 0x140   : > { %v487_v24 = vmin.f32 %v776_v23, 0.0  ;;  %v500_v25 = vmul.f32 1.442695, %v484_v21  ;;  %852 = vpow2.f32 %v504_v22 }
 0x141   : > { %v424_v26 = vpop.f32.mrf.mxu0 }
 0x142   : > { %v506_v27 = vmul.f32 1.442695, %v487_v24  ;;  %v485_v28 = vmin.f32 %v424_v26, 0.0 }
 0x143   : > { %v779_v29 = vpop.f32.mrf.mxu0 }
 0x144   : > { %854 = vpow2.f32 %v506_v27  ;;  %v502_v30 = vmul.f32 1.442695, %v485_v28  ;;  %v490_v7 = vmin.f32 %v779_v29, 0.0  ;;  %v540_v27 = vld [vmem:[%s993_s25] sm:$0x3] }
 0x145   : > { %856 = vpow2.f32 %v500_v25  ;;  %v1016_v31 = vpop.f32.mrf.mxu0  ;;  %v581_v28 = vld [vmem:[%s1004_s9] sm:$0xf] }
 0x146   : > { %858 = vpow2.f32 %v502_v30  ;;  %v512_v10 = vmul.f32 1.442695, %v490_v7  ;;  %v488_v14 = vmin.f32 %v1016_v31, 0.0 }
 0x147   : > { %v780_v32 = vpop.f32.mrf.mxu0 }
 0x148   : > { %v491_v5 = vmin.f32 %v780_v32, 0.0  ;;  %v508_v18 = vmul.f32 1.442695, %v488_v14 }
 0x149   : > { %v440_v33 = vpop.f32.mrf.mxu0 }
 0x14a   : > { %v514_v8 = vmul.f32 1.442695, %v491_v5  ;;  %v489_v12 = vmin.f32 %v440_v33, 0.0 }
 0x14b   : > { %v783_v34 = vpop.f32.mrf.mxu0 }
 0x14c   : > { %v494_v57 = vmin.f32 %v783_v34, 0.0  ;;  %v510_v15 = vmul.f32 1.442695, %v489_v12 }
 0x14d   : > { %v453_v35 = vpop.f32.mrf.mxu0  ;;  %v1018_v37 = vpop.eup %852 }
 0x14e   : > { %v520_v60 = vmul.f32 1.442695, %v494_v57  ;;  %v492_v0 = vmin.f32 %v453_v35, 0.0 }
 0x14f   : > { %v784_v36 = vpop.f32.mrf.mxu0 }
 0x150   : > { %v495_v56 = vmin.f32 %v784_v36, 0.0  ;;  %v516_v3 = vmul.f32 1.442695, %v492_v0 }
 0x151   : > { %v1020_v38 = vpop.eup %854  ;;  %v456_v39 = vpop.f32.mrf.mxu0 }
 0x152   : > { %v1022_v40 = vpop.eup %856  ;;  %v533_v41 = vpack.c.bf16 %v1020_v38, %v1018_v37  ;;  %v522_v58 = vmul.f32 1.442695, %v495_v56  ;;  %v493_v62 = vmin.f32 %v456_v39, 0.0 }
 0x153   : > { %v1026_v42 = vpop.eup %858  ;;  %v787_v43 = vpop.f32.mrf.mxu0 }
 0x154   : > { %v498_v44 = vmin.f32 %v787_v43, 0.0  ;;  %v532_v45 = vpack.c.bf16 %v1026_v42, %v1022_v40  ;;  %v518_v1 = vmul.f32 1.442695, %v493_v62 }
 0x155   : > { %v469_v46 = vpop.f32.mrf.mxu0 }
 0x156   : > { %v528_v47 = vmul.f32 1.442695, %v498_v44  ;;  %v496_v53 = vmin.f32 %v469_v46, 0.0 }
 0x157   : > { %v788_v48 = vpop.f32.mrf.mxu0 }
 0x158   : > { %v499_v49 = vmin.f32 %v788_v48, 0.0  ;;  %860 = vpow2.f32 %v528_v47  ;;  %v524_v55 = vmul.f32 1.442695, %v496_v53 }
 0x159   : > { %v472_v50 = vpop.f32.mrf.mxu0 }
 0x15a   : > { %v530_v51 = vmul.f32 1.442695, %v499_v49  ;;  %v497_v52 = vmin.f32 %v472_v50, 0.0 }
 0x15c   : > { %862 = vpow2.f32 %v530_v51  ;;  %v526_v54 = vmul.f32 1.442695, %v497_v52 }
 0x15e   : > { %864 = vpow2.f32 %v526_v54 }
 0x15f   : > { %866 = vpow2.f32 %v524_v55 }
 0x160   : > { %868 = vpow2.f32 %v522_v58 }
 0x161   : > { %870 = vpow2.f32 %v520_v60 }
 0x162   : > { %872 = vpow2.f32 %v518_v1 }
 0x163   : > { %874 = vpow2.f32 %v516_v3 }
 0x164   : > { %876 = vpow2.f32 %v514_v8 }
 0x165   : > { %v861_v59 = vpop.eup %860  ;;  %878 = vpow2.f32 %v512_v10 }
 0x166   : > { %880 = vpow2.f32 %v510_v15 }
 0x167   : > { %882 = vpow2.f32 %v508_v18 }
 0x169   : > { %v863_v61 = vpop.eup %862 }
 0x16a   : > { %v539_v63 = vpack.c.bf16 %v863_v61, %v861_v59 }
 0x16b   : > { %v865_v2 = vpop.eup %864 }
 0x16c   : > { %790 = vmatpush3.bf16.xpose.msra.mxu1 %v539_v63  ;;  %v867_v4 = vpop.eup %866 }
 0x16d   : > { %791 = vmatprep.subr.bf16.mxu1 %v938_v17  ;;  %v538_v6 = vpack.c.bf16 %v865_v2, %v867_v4  ;;  %v869_v9 = vpop.eup %868 }
 0x16e   : > { %v871_v11 = vpop.eup %870 }
 0x16f   : > { %v537_v13 = vpack.c.bf16 %v869_v9, %v871_v11  ;;  %v873_v16 = vpop.eup %872 }
 0x170   : > { %v875_v19 = vpop.eup %874 }
 0x171   : > { %v536_v20 = vpack.c.bf16 %v873_v16, %v875_v19  ;;  %v877_v21 = vpop.eup %876 }
 0x172   : > { %v879_v22 = vpop.eup %878 }
 0x173   : > { %v535_v23 = vpack.c.bf16 %v877_v21, %v879_v22  ;;  %v881_v24 = vpop.eup %880 }
 0x174   : > { %792 = vmatpush3.bf16.xpose.msra.mxu1 %v538_v6  ;;  %v883_v25 = vpop.eup %882 }
 0x175   : > { %793 = vmatprep.subr.bf16.mxu1 %v938_v17  ;;  %v534_v26 = vpack.c.bf16 %v881_v24, %v883_v25 }
 0x17c   : > { %794 = vmatpush3.bf16.xpose.msra.mxu1 %v537_v13 }
 0x17d   : > { %795 = vmatprep.subr.bf16.mxu1 %v938_v17 }
 0x184   : > { %796 = vmatpush3.bf16.xpose.msra.mxu1 %v536_v20 }
 0x185   : > { %797 = vmatprep.subr.bf16.mxu1 %v938_v17 }
 0x18c   : > { %798 = vmatpush3.bf16.xpose.msra.mxu1 %v535_v23 }
 0x18d   : > { %799 = vmatprep.subr.bf16.mxu1 %v938_v17 }
 0x194   : > { %800 = vmatpush3.bf16.xpose.msra.mxu1 %v534_v26 }
 0x195   : > { %801 = vmatprep.subr.bf16.mxu1 %v938_v17 }
 0x19c   : > { %802 = vmatpush3.bf16.xpose.msra.mxu1 %v533_v41  ;;  %v594_v41 = vld [vmem:[#allocation2] sm:$0xff] }
 0x19d   : > { %803 = vmatprep.subr.bf16.mxu1 %v938_v17 }
 0x1a4   : > { %804 = vmatpush3.bf16.xpose.msra.mxu1 %v532_v45 }
 0x1ab   : > { %806 = vmatmul.mubr.bf16.vlgmr.msra.gmra.mxu1 %v540_v27 }
 0x26b   : > { %v575_v29 = vpop.f32.mrf.mxu1 }
 0x26c   : > { %v582_v30 = vmul.f32 %v581_v28, %v575_v29 }
 0x26d   : > { %v807_v31 = vpop.f32.mrf.mxu1 }
 0x26e   : > { %v584_v32 = vsel %vm583_vm4, %v582_v30, 0.0 }
 0x26f   : > { %585 = vadd.xlane.f32.xlu1 %v584_v32  ;;  %v578_v33 = vpop.f32.mrf.mxu1 }
 0x271   : > { %v808_v34 = vpop.f32.mrf.mxu1 }
 0x2f8   : > { %v586_v35 = vpop.xlane.xlu1 %585 }
 0x2f9   : > { %v587_v36 = vrot.slane %v586_v35, 4 }
 0x2fb   : > { %v588_v37 = vadd.f32 %v587_v36, %v586_v35 }
 0x2fd   : > { %v589_v17 = vrot.slane %v588_v37, 2 }
 0x2ff   : > { %v590_v38 = vadd.f32 %v589_v17, %v588_v37 }
 0x301   : > { %v591_v39 = vrot.slane %v590_v38, 1 }
 0x303   : > { %v592_v40 = vadd.f32 %v591_v39, %v590_v38 }
 0x305   : > { %810 = vpush %v592_v40 }
 0x336   : > { %s811_s10 = spop %810  ;;  %602 = sbr.rel (!%p598_p6) target bundleno = 837 (0x345), region = 44 }
 0x337   : > { %v595_v42 = vstv %s811_s10 }
 0x338   : > { %v596_v43 = vadd.f32 %v595_v42, %v594_v41 }
 0x33a   : > { %597 = vst [vmem:[#allocation2] sm:$0xff] %v596_v43 }
 0x341   : > { %v603_v44 = vld [vmem:[#allocation2] sm:$0xff] }
 0x342   : > { %v604_v45 = vmul.f32 -0.05, %v603_v44 }
 0x344   : > { %605 = vst [vmem:[#allocation3] sm:$0xff] %v604_v45 }
 0x345 PF: > { %p1051_p7 = scmp.eq.s32.totalorder %s722_s18, 1  ;;  %s940_s12 = smov [#allocation3]  }
 0x346   : > { %s615_s13 = sshll.u32 %s940_s12, 4  ;;  %s616_s13 = int_to_ptr.vmem [resolvable:$true] %s615_s13 }
 0x347   : > { %s884_s14 = scalar_lea.vmem %s616_s13, 128  ;;  %p891_p11 = scmp.lt.s32.totalorder %s616_s13, %s616_s13 }
 0x348   : > { %p885_p8 = scmp.ne.s32.totalorder %s616_s13, %s884_s14  ;;  %p892_p12 = scmp.lt.s32.totalorder %s884_s14, %s884_s14 }
 0x34a   : > { %p886_p9 = pnand %p885_p8, %p1051_p7  ;;  %p893_p13 = por %p892_p12, %p891_p11 }
 0x34c   : > { %p887_p10 = pneg %p886_p9 }
 0x34e   : > { %p894_p0 = pnand %p893_p13, %p887_p10 }
 0x350   : > { %897 = shalt.err (!%p894_p0)
}
 0x351   : > { %813 = dma.vmem_to_hbm [thread:$0]  (%p1051_p7), %s616_s13, 128, %s1079_s4, [#allocation4]  }
 0x352   : > { %921 = dma.done.wait (%p1051_p7), [#allocation4], 128  }
 0x353   : > { %923 = vsyncadd (%p1051_p7), [#allocation4], 4294967168 }
 0x354 PF: > { %s15_s17 = sadd.s32 1, %s934_s17   ;;  %s1081_s15 = smov %s930_s16 }
 0x355   : > { %p12_p1 = scmp.ge.s32.totalorder %s15_s17, 4   ;;  %s1082_s16 = smov %s1084_s19 }
 0x357   :  { %14 = sbr.rel (!%p12_p1) target bundleno = 2 (0x2), region = 81 }
 0x35c   :  { %628 = vsyncpa [#allocation4], 1 }
 0x35d   :  { %630 = vsyncpa [#allocation4 + $0x1], 1 }

</bundles_post_ra>
